<compile_context>
chip_gen: v7x
topology: tpu7x:2x2x1
jax: 0.10.0
libtpu: 0.0.40
codegen_flags: <defaults>
</compile_context>

<pallas_src>
import functools

import jax
import jax.numpy as jnp
from jax.experimental import pallas as pl
from jax.experimental.pallas import tpu as pltpu

H_LSTM = 128          # LSTM hidden size
H = 64                # H1 = H2 = H3
F_IN = 3              # per-entity feature size (LSTM input / linear1 output size)
FEAT = 2 * F_IN       # cat(ship(3), chosen_asteroid(3))
WIDE = 128            # lane width of every activation slab / fused head width

# Parameter-slab row layout (every block start is a multiple of 8 -> aligned).
ROW_GI = 0            # rows  0:3   = W_ih(i-gate)^T  (3, 128)
ROW_GG = 8            # rows  8:11  = W_ih(g-gate)^T
ROW_GO = 16           # rows 16:19  = W_ih(o-gate)^T
ROW_BIAS = 24         # 8 rows: [b_i, b_g, b_o, l1_bias(-1e30 padded), b1, b2, b3, b4]
ROW_L1W = 32          # (128,128): cols 0:3 = linear1 weight^T, rest 0
ROW_W1 = 160          # (128,128): fused a/v fc1 laid out in obs-lane space
ROW_W2 = 288          # (128,128): blockdiag(a_fc2^T, v_fc2^T)
ROW_W3 = 416          # (128,128): blockdiag(a_fc3^T, v_fc3^T)
ROW_W4 = 544          # (128,128): [:64,:64]=I, [64:,64]=v_fc4 (x | value merge)
R_TOTAL = 672         # 672 x 128 f32 ~= 336 KiB


# ----------------------------------------------------------------------------
# Fused kernel: LSTM step 0 -> index scalar -> lane-mask select -> MLP heads
# ----------------------------------------------------------------------------
def fused_policy_kernel(obs_ref, p_ref, out_ref, *, n_ast):
    # obs_ref: (B, 128) lane-dense observation slab:
    #          lanes 0:3 = ship, lanes 3+3t:6+3t = asteroid t, rest zero.
    # p_ref  : (672, 128) packed parameter slab (layout in module constants).
    # out_ref: (B, 128): lanes 0:64 = action-head features x, lane 64 = value.
    obs = obs_ref[...]
    b = p_ref[ROW_BIAS:ROW_BIAS + 8, :]                    # all 8 bias rows

    # ---- LSTM step 0, batch row 0 only ----
    # h_{-1} = c_{-1} = 0 kills the W_hh term and the forget gate; only the
    # scalar y[0,0,0] is consumed downstream, so t>0 steps / rows>0 are dead.
    x0 = obs[0:1, F_IN:2 * F_IN]                           # asteroid-0 feats (1, 3)
    i_g = jax.nn.sigmoid(
        jnp.dot(x0, p_ref[ROW_GI:ROW_GI + F_IN, :],
                preferred_element_type=jnp.float32) + b[0:1, :])
    g_g = jnp.tanh(
        jnp.dot(x0, p_ref[ROW_GG:ROW_GG + F_IN, :],
                preferred_element_type=jnp.float32) + b[1:2, :])
    o_g = jax.nn.sigmoid(
        jnp.dot(x0, p_ref[ROW_GO:ROW_GO + F_IN, :],
                preferred_element_type=jnp.float32) + b[2:3, :])
    h0 = o_g * jnp.tanh(i_g * g_g)                         # (1, 128)

    # ---- linear1 + log_softmax -> y[0,0,0] ----
    # TODO(synk): reference uses deprecated implicit-dim F.log_softmax on a 3-D
    # tensor and `int(y)` on a multi-element tensor (raises in PyTorch); as in
    # the previous version we normalize over the class axis and truncate
    # y[0,0,0] toward zero like Python int().
    # Bias lanes 3:128 are -1e30, so the full-lane max/sum reduce to 3 classes.
    logits = (jnp.dot(h0, p_ref[ROW_L1W:ROW_L1W + WIDE, :],
                      preferred_element_type=jnp.float32) + b[3:4, :])   # (1, 128)
    m = jnp.max(logits, axis=-1, keepdims=True)
    lse = m + jnp.log(jnp.sum(jnp.exp(logits - m), axis=-1, keepdims=True))
    y000 = logits[:, 0:1] - lse                            # (1, 1)

    # Python-style `int(y) % n_ast` in f32 (exact for small ints); wrap guards
    # protect against floor rounding.
    tf = jnp.float32(n_ast)
    yi = jnp.trunc(y000)                                   # == float(int(y))
    idx = (yi - tf * jnp.floor(yi / tf)).astype(jnp.int32)
    idx = jnp.where(idx >= n_ast, idx - n_ast, idx)
    idx = jnp.where(idx < 0, idx + n_ast, idx)             # (1, 1) in [0, n_ast)

    # ---- feat = cat(ship, ast[idx]) as a single iota lane-mask select ----
    lane = jax.lax.broadcasted_iota(jnp.int32, (1, WIDE), 1)
    lo = F_IN + F_IN * idx                                 # first lane of chosen ast
    keep = (lane < F_IN) | ((lane >= lo) & (lane < lo + F_IN))
    feat = jnp.where(keep, obs, 0.0)                       # (B, 128), rest zeroed

    # ---- fused MLP heads (cols 0:64 = action head, 64:128 = value head) ----
    h1 = jnp.tanh(jnp.dot(feat, p_ref[ROW_W1:ROW_W1 + WIDE, :],
                          preferred_element_type=jnp.float32) + b[4:5, :])
    h2 = jnp.tanh(jnp.dot(h1, p_ref[ROW_W2:ROW_W2 + WIDE, :],
                          preferred_element_type=jnp.float32) + b[5:6, :])
    h3 = jnp.tanh(jnp.dot(h2, p_ref[ROW_W3:ROW_W3 + WIDE, :],
                          preferred_element_type=jnp.float32) + b[6:7, :])
    # W4 passes the action features through (identity block) and folds v_fc4
    # into lane 64 -> one matmul, one lane-dense output slab.
    out_ref[...] = (jnp.dot(h3, p_ref[ROW_W4:ROW_W4 + WIDE, :],
                            preferred_element_type=jnp.float32) + b[7:8, :])


# ----------------------------------------------------------------------------
# Parameter construction (mirrors module __init__ / reset_parameters)
# ----------------------------------------------------------------------------
def _mlp_linear(key, out_f, in_f):
    """weights_init_mlp: N(0,1) rows normalized to unit L2 norm, bias = 0."""
    w = jax.random.normal(key, (out_f, in_f), jnp.float32)
    w = w / jnp.sqrt(jnp.sum(w * w, axis=1, keepdims=True))
    b = jnp.zeros((1, out_f), jnp.float32)
    return w.T, b                                          # (in, out), (1, out)


def _lstm_params(key):
    """PyTorch LSTM default init: U(-1/sqrt(H), 1/sqrt(H)). weights_init_mlp
    does not touch the LSTM (classname 'LSTM' contains no 'Linear')."""
    k = 1.0 / jnp.sqrt(jnp.float32(H_LSTM))
    k1, k2, k3, k4 = jax.random.split(key, 4)
    w_ih = jax.random.uniform(k1, (4 * H_LSTM, F_IN), jnp.float32, -k, k)
    w_hh = jax.random.uniform(k2, (4 * H_LSTM, H_LSTM), jnp.float32, -k, k)
    b_ih = jax.random.uniform(k3, (4 * H_LSTM,), jnp.float32, -k, k)
    b_hh = jax.random.uniform(k4, (4 * H_LSTM,), jnp.float32, -k, k)
    return w_ih.T, w_hh.T, (b_ih + b_hh).reshape(1, 4 * H_LSTM)


def make_params(seed=0):
    keys = jax.random.split(jax.random.PRNGKey(seed), 10)
    p = {}
    p["lstm_wih"], p["lstm_whh"], p["lstm_b"] = _lstm_params(keys[0])
    p["l1_w"], p["l1_b"] = _mlp_linear(keys[1], F_IN, H_LSTM)   # linear1: 128 -> 3
    p["vw1"], p["vb1"] = _mlp_linear(keys[2], H, FEAT)
    p["vw2"], p["vb2"] = _mlp_linear(keys[3], H, H)
    p["vw3"], p["vb3"] = _mlp_linear(keys[4], H, H)
    p["vw4"], p["vb4"] = _mlp_linear(keys[5], 1, H)
    p["aw1"], p["ab1"] = _mlp_linear(keys[6], H, FEAT)
    p["aw2"], p["ab2"] = _mlp_linear(keys[7], H, H)
    p["aw3"], p["ab3"] = _mlp_linear(keys[8], H, H)
    return p


def pack_params(p):
    """One-time host-side packing of every parameter into a single lane-dense
    (672, 128) f32 slab (one input DMA). lstm_whh / the forget gate cannot
    affect the returned outputs (zero initial state, only y[0,0,0] is
    consumed), so they are intentionally not shipped to the kernel."""
    slab = jnp.zeros((R_TOTAL, WIDE), jnp.float32)

    # LSTM input weights; torch gate order is [i | f | g | o] column blocks.
    wih = p["lstm_wih"]                                    # (3, 512)
    slab = slab.at[ROW_GI:ROW_GI + F_IN, :].set(wih[:, 0:128])
    slab = slab.at[ROW_GG:ROW_GG + F_IN, :].set(wih[:, 256:384])
    slab = slab.at[ROW_GO:ROW_GO + F_IN, :].set(wih[:, 384:512])
    lb = p["lstm_b"]                                       # (1, 512) = b_ih + b_hh
    slab = slab.at[ROW_BIAS + 0, :].set(lb[0, 0:128])
    slab = slab.at[ROW_BIAS + 1, :].set(lb[0, 256:384])
    slab = slab.at[ROW_BIAS + 2, :].set(lb[0, 384:512])

    # linear1 (128 -> 3) padded to 128 lanes; pad lanes get a -1e30 bias so the
    # in-kernel full-lane log-softmax reduces exactly to the 3 real classes.
    slab = slab.at[ROW_L1W:ROW_L1W + H_LSTM, 0:F_IN].set(p["l1_w"])
    l1b = jnp.full((WIDE,), -1e30, jnp.float32).at[0:F_IN].set(p["l1_b"][0])
    slab = slab.at[ROW_BIAS + 3, :].set(l1b)

    # Fused fc1 in observation-lane space: ship rows at lanes 0:3, asteroid rows
    # replicated at every asteroid slot (the kernel's lane mask picks one).
    w1 = jnp.concatenate([p["aw1"], p["vw1"]], axis=1)     # (6, 128)
    slab = slab.at[ROW_W1:ROW_W1 + F_IN, :].set(w1[0:F_IN, :])
    reps = (WIDE - F_IN) // F_IN                           # 41 asteroid slots
    slab = slab.at[ROW_W1 + F_IN:ROW_W1 + F_IN + reps * F_IN, :].set(
        jnp.tile(w1[F_IN:2 * F_IN, :], (reps, 1)))
    slab = slab.at[ROW_BIAS + 4, :].set(
        jnp.concatenate([p["ab1"], p["vb1"]], axis=1)[0])

    def blockdiag(a, v):
        m = jnp.zeros((WIDE, WIDE), jnp.float32)
        return m.at[0:H, 0:H].set(a).at[H:WIDE, H:WIDE].set(v)

    slab = slab.at[ROW_W2:ROW_W2 + WIDE, :].set(blockdiag(p["aw2"], p["vw2"]))
    slab = slab.at[ROW_W3:ROW_W3 + WIDE, :].set(blockdiag(p["aw3"], p["vw3"]))
    slab = slab.at[ROW_BIAS + 5, :].set(
        jnp.concatenate([p["ab2"], p["vb2"]], axis=1)[0])
    slab = slab.at[ROW_BIAS + 6, :].set(
        jnp.concatenate([p["ab3"], p["vb3"]], axis=1)[0])

    # Output merge: identity pass-through for x (lanes 0:64), v_fc4 into lane 64.
    w4 = (jnp.zeros((WIDE, WIDE), jnp.float32)
          .at[0:H, 0:H].set(jnp.eye(H, dtype=jnp.float32))
          .at[H:WIDE, H].set(p["vw4"][:, 0]))
    slab = slab.at[ROW_W4:ROW_W4 + WIDE, :].set(w4)
    slab = slab.at[ROW_BIAS + 7, :].set(
        jnp.zeros((WIDE,), jnp.float32).at[H].set(p["vb4"][0, 0]))
    return slab


# ----------------------------------------------------------------------------
# Forward pass (obs_norm=0 -> ObsNorm is identity)
# ----------------------------------------------------------------------------
@jax.jit
def mlp_policy_test_forward(param_slab, inputs):
    B, N, _ = inputs.shape
    assert F_IN * N <= WIDE, "observation must fit one 128-lane slab"
    n_ast = N - 1
    # Lane-dense observation slab: ship at lanes 0:3, asteroid t at 3+3t:6+3t.
    obs = jnp.zeros((B, WIDE), jnp.float32).at[:, 0:F_IN * N].set(
        inputs.astype(jnp.float32).reshape(B, F_IN * N))

    vmem = pl.BlockSpec(memory_space=pltpu.MemorySpace.VMEM)
    out = pl.pallas_call(
        functools.partial(fused_policy_kernel, n_ast=n_ast),
        out_shape=jax.ShapeDtypeStruct((B, WIDE), jnp.float32),
        in_specs=[vmem, vmem],
        out_specs=vmem,
    )(obs, param_slab)

    value = out[:, H:H + 1]      # (B, 1)
    x = out[:, 0:H]              # (B, 64) action-head features
    return value, x


if __name__ == "__main__":
    B, N = 2, 4                  # batch=2, 1 ship + 3 asteroids, 3 features each
    key = jax.random.PRNGKey(0)
    inputs = jax.random.normal(key, (B, N, F_IN), jnp.float32)

    params = make_params(seed=0)
    param_slab = pack_params(params)

    value, x = mlp_policy_test_forward(param_slab, inputs)
    jax.block_until_ready((value, x))

    assert value.shape == (B, 1) and value.dtype == jnp.float32
    assert x.shape == (B, H) and x.dtype == jnp.float32
    assert bool(jnp.all(jnp.isfinite(value))) and bool(jnp.all(jnp.isfinite(x)))
    print("KERNEL_OK")
</pallas_src>

<mosaic_0001>
module attributes {stable_mosaic.version = 11 : i64} {
  func.func @fused_policy_kernel(%arg0: memref<2x128xf32, #tpu.memory_space<vmem>>, %arg1: memref<672x128xf32, #tpu.memory_space<vmem>>, %arg2: memref<2x128xf32, #tpu.memory_space<vmem>>) attributes {dimension_semantics = [], scalar_prefetch = 0 : i64, scratch_operands = 0 : i64, tpu.core_type = #tpu.core_type<tc>} {
    %c0 = arith.constant 0 : index
    %c0_0 = arith.constant 0 : index
    %0 = vector.load %arg0[%c0, %c0_0] : memref<2x128xf32, #tpu.memory_space<vmem>>, vector<2x128xf32>
    %c24 = arith.constant 24 : index
    %c0_1 = arith.constant 0 : index
    %1 = vector.load %arg1[%c24, %c0_1] : memref<672x128xf32, #tpu.memory_space<vmem>>, vector<8x128xf32>
    %2 = vector.extract_strided_slice %0 {offsets = [0, 3], sizes = [1, 3], strides = [1, 1]} : vector<2x128xf32> to vector<1x3xf32>
    %c0_2 = arith.constant 0 : index
    %c0_3 = arith.constant 0 : index
    %3 = vector.load %arg1[%c0_2, %c0_3] : memref<672x128xf32, #tpu.memory_space<vmem>>, vector<3x128xf32>
    %cst = arith.constant dense<0.000000e+00> : vector<1x128xf32>
    %4 = tpu.matmul %2, %3, %cst {dimension_numbers = #tpu.dot_dimension_numbers<[1], [0], [0], [1], [0, 0, 1, 1], [], []>} : vector<1x3xf32>, vector<3x128xf32>, vector<1x128xf32> -> vector<1x128xf32>
    %5 = vector.extract_strided_slice %1 {offsets = [0, 0], sizes = [1, 128], strides = [1, 1]} : vector<8x128xf32> to vector<1x128xf32>
    %6 = arith.addf %4, %5 : vector<1x128xf32>
    %7 = arith.negf %6 : vector<1x128xf32>
    %8 = math.exp %7 : vector<1x128xf32>
    %cst_4 = arith.constant 1.000000e+00 : f32
    %9 = vector.broadcast %cst_4 : f32 to vector<1x128xf32>
    %10 = arith.addf %9, %8 : vector<1x128xf32>
    %11 = arith.divf %9, %10 : vector<1x128xf32>
    %c8 = arith.constant 8 : index
    %c0_5 = arith.constant 0 : index
    %12 = vector.load %arg1[%c8, %c0_5] : memref<672x128xf32, #tpu.memory_space<vmem>>, vector<3x128xf32>
    %cst_6 = arith.constant dense<0.000000e+00> : vector<1x128xf32>
    %13 = tpu.matmul %2, %12, %cst_6 {dimension_numbers = #tpu.dot_dimension_numbers<[1], [0], [0], [1], [0, 0, 1, 1], [], []>} : vector<1x3xf32>, vector<3x128xf32>, vector<1x128xf32> -> vector<1x128xf32>
    %14 = vector.extract_strided_slice %1 {offsets = [1, 0], sizes = [1, 128], strides = [1, 1]} : vector<8x128xf32> to vector<1x128xf32>
    %15 = arith.addf %13, %14 : vector<1x128xf32>
    %16 = math.tanh %15 : vector<1x128xf32>
    %c16 = arith.constant 16 : index
    %c0_7 = arith.constant 0 : index
    %17 = vector.load %arg1[%c16, %c0_7] : memref<672x128xf32, #tpu.memory_space<vmem>>, vector<3x128xf32>
    %cst_8 = arith.constant dense<0.000000e+00> : vector<1x128xf32>
    %18 = tpu.matmul %2, %17, %cst_8 {dimension_numbers = #tpu.dot_dimension_numbers<[1], [0], [0], [1], [0, 0, 1, 1], [], []>} : vector<1x3xf32>, vector<3x128xf32>, vector<1x128xf32> -> vector<1x128xf32>
    %19 = vector.extract_strided_slice %1 {offsets = [2, 0], sizes = [1, 128], strides = [1, 1]} : vector<8x128xf32> to vector<1x128xf32>
    %20 = arith.addf %18, %19 : vector<1x128xf32>
    %21 = arith.negf %20 : vector<1x128xf32>
    %22 = math.exp %21 : vector<1x128xf32>
    %cst_9 = arith.constant 1.000000e+00 : f32
    %23 = vector.broadcast %cst_9 : f32 to vector<1x128xf32>
    %24 = arith.addf %23, %22 : vector<1x128xf32>
    %25 = arith.divf %23, %24 : vector<1x128xf32>
    %26 = arith.mulf %11, %16 : vector<1x128xf32>
    %27 = math.tanh %26 : vector<1x128xf32>
    %28 = arith.mulf %25, %27 : vector<1x128xf32>
    %c32 = arith.constant 32 : index
    %c0_10 = arith.constant 0 : index
    %29 = vector.load %arg1[%c32, %c0_10] : memref<672x128xf32, #tpu.memory_space<vmem>>, vector<128x128xf32>
    %cst_11 = arith.constant dense<0.000000e+00> : vector<1x128xf32>
    %30 = tpu.matmul %28, %29, %cst_11 {dimension_numbers = #tpu.dot_dimension_numbers<[1], [0], [0], [1], [0, 0, 1, 1], [], []>} : vector<1x128xf32>, vector<128x128xf32>, vector<1x128xf32> -> vector<1x128xf32>
    %31 = vector.extract_strided_slice %1 {offsets = [3, 0], sizes = [1, 128], strides = [1, 1]} : vector<8x128xf32> to vector<1x128xf32>
    %32 = arith.addf %30, %31 : vector<1x128xf32>
    %cst_12 = arith.constant dense<0xFF800000> : vector<1xf32>
    %33 = vector.multi_reduction <maximumf>, %32, %cst_12 [1] : vector<1x128xf32> to vector<1xf32>
    %34 = vector.shape_cast %33 : vector<1xf32> to vector<1x1xf32>
    %35 = vector.broadcast %34 : vector<1x1xf32> to vector<1x128xf32>
    %36 = arith.subf %32, %35 : vector<1x128xf32>
    %37 = math.exp %36 : vector<1x128xf32>
    %cst_13 = arith.constant dense<0.000000e+00> : vector<1xf32>
    %38 = vector.multi_reduction <add>, %37, %cst_13 [1] : vector<1x128xf32> to vector<1xf32>
    %39 = vector.shape_cast %38 : vector<1xf32> to vector<1x1xf32>
    %40 = math.log %39 : vector<1x1xf32>
    %41 = arith.addf %34, %40 : vector<1x1xf32>
    %42 = vector.extract_strided_slice %32 {offsets = [0, 0], sizes = [1, 1], strides = [1, 1]} : vector<1x128xf32> to vector<1x1xf32>
    %43 = arith.subf %42, %41 : vector<1x1xf32>
    %cst_14 = arith.constant 0.000000e+00 : f32
    %44 = vector.broadcast %cst_14 : f32 to vector<1x1xf32>
    %45 = arith.cmpf olt, %43, %44 : vector<1x1xf32>
    %46 = math.ceil %43 : vector<1x1xf32>
    %47 = math.floor %43 : vector<1x1xf32>
    %48 = arith.select %45, %46, %47 : vector<1x1xi1>, vector<1x1xf32>
    %cst_15 = arith.constant 3.000000e+00 : f32
    %49 = vector.broadcast %cst_15 : f32 to vector<1x1xf32>
    %50 = arith.divf %48, %49 : vector<1x1xf32>
    %51 = math.floor %50 : vector<1x1xf32>
    %cst_16 = arith.constant 3.000000e+00 : f32
    %52 = vector.broadcast %cst_16 : f32 to vector<1x1xf32>
    %53 = arith.mulf %52, %51 : vector<1x1xf32>
    %54 = arith.subf %48, %53 : vector<1x1xf32>
    %55 = arith.fptosi %54 : vector<1x1xf32> to vector<1x1xi32>
    %c3_i32 = arith.constant 3 : i32
    %56 = vector.broadcast %c3_i32 : i32 to vector<1x1xi32>
    %57 = arith.cmpi sge, %55, %56 : vector<1x1xi32>
    %c3_i32_17 = arith.constant 3 : i32
    %58 = vector.broadcast %c3_i32_17 : i32 to vector<1x1xi32>
    %59 = arith.subi %55, %58 : vector<1x1xi32>
    %60 = arith.select %57, %59, %55 : vector<1x1xi1>, vector<1x1xi32>
    %c0_i32 = arith.constant 0 : i32
    %61 = vector.broadcast %c0_i32 : i32 to vector<1x1xi32>
    %62 = arith.cmpi slt, %60, %61 : vector<1x1xi32>
    %c3_i32_18 = arith.constant 3 : i32
    %63 = vector.broadcast %c3_i32_18 : i32 to vector<1x1xi32>
    %64 = arith.addi %60, %63 : vector<1x1xi32>
    %65 = arith.select %62, %64, %60 : vector<1x1xi1>, vector<1x1xi32>
    %66 = tpu.iota {dimensions = array<i32: 1>} : vector<1x128xi32>
    %c3_i32_19 = arith.constant 3 : i32
    %67 = vector.broadcast %c3_i32_19 : i32 to vector<1x1xi32>
    %68 = arith.muli %67, %65 : vector<1x1xi32>
    %c3_i32_20 = arith.constant 3 : i32
    %69 = vector.broadcast %c3_i32_20 : i32 to vector<1x1xi32>
    %70 = arith.addi %69, %68 : vector<1x1xi32>
    %c3_i32_21 = arith.constant 3 : i32
    %71 = vector.broadcast %c3_i32_21 : i32 to vector<1x128xi32>
    %72 = arith.cmpi slt, %66, %71 : vector<1x128xi32>
    %73 = vector.broadcast %70 : vector<1x1xi32> to vector<1x128xi32>
    %74 = arith.cmpi sge, %66, %73 : vector<1x128xi32>
    %c3_i32_22 = arith.constant 3 : i32
    %75 = vector.broadcast %c3_i32_22 : i32 to vector<1x1xi32>
    %76 = arith.addi %70, %75 : vector<1x1xi32>
    %77 = vector.broadcast %76 : vector<1x1xi32> to vector<1x128xi32>
    %78 = arith.cmpi slt, %66, %77 : vector<1x128xi32>
    %79 = arith.andi %74, %78 : vector<1x128xi1>
    %80 = arith.ori %72, %79 : vector<1x128xi1>
    %cst_23 = arith.constant 0.000000e+00 : f32
    %81 = vector.shape_cast %80 : vector<1x128xi1> to vector<1x128xi1>
    %82 = vector.broadcast %81 : vector<1x128xi1> to vector<2x128xi1>
    %83 = vector.broadcast %cst_23 : f32 to vector<2x128xf32>
    %84 = arith.select %82, %0, %83 : vector<2x128xi1>, vector<2x128xf32>
    %c160 = arith.constant 160 : index
    %c0_24 = arith.constant 0 : index
    %85 = vector.load %arg1[%c160, %c0_24] : memref<672x128xf32, #tpu.memory_space<vmem>>, vector<128x128xf32>
    %cst_25 = arith.constant dense<0.000000e+00> : vector<2x128xf32>
    %86 = tpu.matmul %84, %85, %cst_25 {dimension_numbers = #tpu.dot_dimension_numbers<[1], [0], [0], [1], [0, 0, 1, 1], [], []>} : vector<2x128xf32>, vector<128x128xf32>, vector<2x128xf32> -> vector<2x128xf32>
    %87 = vector.extract_strided_slice %1 {offsets = [4, 0], sizes = [1, 128], strides = [1, 1]} : vector<8x128xf32> to vector<1x128xf32>
    %88 = vector.broadcast %87 : vector<1x128xf32> to vector<2x128xf32>
    %89 = arith.addf %86, %88 : vector<2x128xf32>
    %90 = math.tanh %89 : vector<2x128xf32>
    %c288 = arith.constant 288 : index
    %c0_26 = arith.constant 0 : index
    %91 = vector.load %arg1[%c288, %c0_26] : memref<672x128xf32, #tpu.memory_space<vmem>>, vector<128x128xf32>
    %cst_27 = arith.constant dense<0.000000e+00> : vector<2x128xf32>
    %92 = tpu.matmul %90, %91, %cst_27 {dimension_numbers = #tpu.dot_dimension_numbers<[1], [0], [0], [1], [0, 0, 1, 1], [], []>} : vector<2x128xf32>, vector<128x128xf32>, vector<2x128xf32> -> vector<2x128xf32>
    %93 = vector.extract_strided_slice %1 {offsets = [5, 0], sizes = [1, 128], strides = [1, 1]} : vector<8x128xf32> to vector<1x128xf32>
    %94 = vector.broadcast %93 : vector<1x128xf32> to vector<2x128xf32>
    %95 = arith.addf %92, %94 : vector<2x128xf32>
    %96 = math.tanh %95 : vector<2x128xf32>
    %c416 = arith.constant 416 : index
    %c0_28 = arith.constant 0 : index
    %97 = vector.load %arg1[%c416, %c0_28] : memref<672x128xf32, #tpu.memory_space<vmem>>, vector<128x128xf32>
    %cst_29 = arith.constant dense<0.000000e+00> : vector<2x128xf32>
    %98 = tpu.matmul %96, %97, %cst_29 {dimension_numbers = #tpu.dot_dimension_numbers<[1], [0], [0], [1], [0, 0, 1, 1], [], []>} : vector<2x128xf32>, vector<128x128xf32>, vector<2x128xf32> -> vector<2x128xf32>
    %99 = vector.extract_strided_slice %1 {offsets = [6, 0], sizes = [1, 128], strides = [1, 1]} : vector<8x128xf32> to vector<1x128xf32>
    %100 = vector.broadcast %99 : vector<1x128xf32> to vector<2x128xf32>
    %101 = arith.addf %98, %100 : vector<2x128xf32>
    %102 = math.tanh %101 : vector<2x128xf32>
    %c544 = arith.constant 544 : index
    %c0_30 = arith.constant 0 : index
    %103 = vector.load %arg1[%c544, %c0_30] : memref<672x128xf32, #tpu.memory_space<vmem>>, vector<128x128xf32>
    %cst_31 = arith.constant dense<0.000000e+00> : vector<2x128xf32>
    %104 = tpu.matmul %102, %103, %cst_31 {dimension_numbers = #tpu.dot_dimension_numbers<[1], [0], [0], [1], [0, 0, 1, 1], [], []>} : vector<2x128xf32>, vector<128x128xf32>, vector<2x128xf32> -> vector<2x128xf32>
    %105 = vector.extract_strided_slice %1 {offsets = [7, 0], sizes = [1, 128], strides = [1, 1]} : vector<8x128xf32> to vector<1x128xf32>
    %106 = vector.broadcast %105 : vector<1x128xf32> to vector<2x128xf32>
    %107 = arith.addf %104, %106 : vector<2x128xf32>
    %c0_32 = arith.constant 0 : index
    %c0_33 = arith.constant 0 : index
    %108 = vector.load %arg2[%c0_32, %c0_33] : memref<2x128xf32, #tpu.memory_space<vmem>>, vector<2x128xf32>
    tpu.vector_store %arg2[%c0_32, %c0_33], %107 {strides = array<i32>} : memref<2x128xf32, #tpu.memory_space<vmem>>, vector<2x128xf32>,
    return
  }
}

</mosaic_0001>

<bundles_post_ra>
// kernel: mlp_policy_test_forward.1
= control target key start
LH: loop header
LB: loop body
LE: loop exit
PB: predicated region body
PF: predicated region fallthrough
CT: control target
= control target key end

     0   :  { %7 = vsyncpa [#allocation3], 0  ;;  %s1256_s9 = smov [#allocation2]   ;;  %s1383_s0 = inlined_call_operand.vmem [shape: f32[2,128], index: 0, kind: input, shape index: {}]   ;;  %s1384_s1 = inlined_call_operand.hbm [shape: f32[672,128], index: 1, kind: input, shape index: {}]   ;;  %s1385_s2 = inlined_call_operand.vmem [shape: f32[2,128], index: 2, kind: output, shape index: {}]  }
   0x1   :  { %s15_s10 = sshll.u32 %s1256_s9, 4  ;;  %s1232_s13 = scalar_lea.hbm %s1384_s1, 10752  ;;  %s16_s10 = int_to_ptr.vmem [resolvable:$true] %s15_s10 }
   0x2   :  { %p1233_p0 = scmp.ne.s32.totalorder %s1384_s1, %s1232_s13  ;;  %p1236_p1 = scmp.lt.u32.totalorder %s1232_s13, %s1384_s1 }
   0x4   :  { %p1238_p2 = pnand %p1236_p1, %p1233_p0 }
   0x6   :  { %1241 = shalt.err (!%p1238_p2)
}
   0x7   :  { %s1242_s18 = scalar_lea.vmem %s16_s10, 10752  ;;  %p1247_p4 = scmp.lt.s32.totalorder %s16_s10, %s16_s10 }
   0x8   :  { %p1243_p3 = scmp.ne.s32.totalorder %s16_s10, %s1242_s18  ;;  %p1248_p5 = scmp.lt.s32.totalorder %s1242_s18, %s1242_s18 }
   0xa   :  { %p1249_p6 = por %p1248_p5, %p1247_p4 }
   0xc   :  { %p1250_p7 = pnand %p1249_p6, %p1243_p3 }
   0xe   :  { %1253 = shalt.err (!%p1250_p7)
}
   0xf   :  { %s1257_s19 = smov 128   ;;  %s1258_s20 = smov 8  }
  0x10   :  { %21 = dma.hbm_to_vmem [thread:$0]  %s1384_s1, 10752, %s16_s10, [#allocation3], %s1257_s19, %s1257_s19, %s1258_s20  }
  0x11   :  { %1254 = dma.done.wait [#allocation3], 10752  }
  0x12   :  { %1255 = vsyncadd [#allocation3], 4294956544  ;;  %v1259_v0 = vmov 0.0   ;;  %vm1260_vm0 = vmmov 0   ;;  %vm34_vm1 = vcmask 1042432   ;;  %s1261_s1 = smov 125  }
  0x13   :  { %888 = vmatprep.subr.mxu0 %v1259_v0  ;;  %890 = vmatprep.mubr.msk.f32.mxu0 %vm1260_vm0, %v1259_v0  ;;  %v1299_v1 = vld [vmem:[%s1383_s0] sm:$0x3]  ;;  %vm31_vm2 = vcmask 23552   ;;  %v114_v3 = vld [vmem:[#allocation2 + $0x8] sm:$0x7]  ;;  %v1262_v9 = vmov 0.0|0.0  }
  0x14   :  { %935 = vmatprep.mubr.msk.f32.mxu1 %vm1260_vm0, %v1259_v0  ;;  %v27_v2 = vld [vmem:[#allocation2] sm:$0x7]  ;;  %29 = vrot.lane.b32.xlu0 %v1299_v1, %s1261_s1  ;;  %v192_v5 = vld [vmem:[#allocation2 + $0x10] sm:$0x7]  ;;  %v278_v7 = vld [vmem:[#allocation2 + $0x28] sm:$0xff]  ;;  %vm365_vm3 = vcmask 1040384  }
  0x15   :  { %889 = vmatpush3.msk.msra.mxu0 %vm34_vm1, %v27_v2  ;;  %v277_v6 = vld [vmem:[#allocation2 + $0x20] sm:$0xff]  ;;  %1078 = vmatprep.subr.bf16.mxu1 %v1262_v9  ;;  %v279_v10 = vld [vmem:[#allocation2 + $0x30] sm:$0xff]  ;;  %v280_v11 = vld [vmem:[#allocation2 + $0x38] sm:$0xff] }
  0x16   :  { %893 = vmatprep.subr.mxu0 %v1259_v0  ;;  %v1079_v8 = vpack.c.bf16 %v278_v7, %v277_v6  ;;  %v1082_v12 = vpack.c.bf16 %v280_v11, %v279_v10  ;;  %v281_v13 = vld [vmem:[#allocation2 + $0x40] sm:$0xff]  ;;  %v282_v14 = vld [vmem:[#allocation2 + $0x48] sm:$0xff]  ;;  %v283_v16 = vld [vmem:[#allocation2 + $0x50] sm:$0xff] }
  0x17   :  { %v1085_v15 = vpack.c.bf16 %v282_v14, %v281_v13  ;;  %v284_v17 = vld [vmem:[#allocation2 + $0x58] sm:$0xff]  ;;  %v285_v19 = vld [vmem:[#allocation2 + $0x60] sm:$0xff]  ;;  %v286_v20 = vld [vmem:[#allocation2 + $0x68] sm:$0xff] }
  0x18   :  { %1080 = vmatpush3.bf16.msra.mxu1 %v1079_v8  ;;  %v1088_v18 = vpack.c.bf16 %v284_v17, %v283_v16  ;;  %v1091_v21 = vpack.c.bf16 %v286_v20, %v285_v19  ;;  %v287_v22 = vld [vmem:[#allocation2 + $0x70] sm:$0xff]  ;;  %v288_v23 = vld [vmem:[#allocation2 + $0x78] sm:$0xff]  ;;  %v289_v25 = vld [vmem:[#allocation2 + $0x80] sm:$0xff] }
  0x19   :  { %1081 = vmatprep.subr.bf16.mxu1 %v1262_v9  ;;  %v1094_v24 = vpack.c.bf16 %v288_v23, %v287_v22  ;;  %v290_v26 = vld [vmem:[#allocation2 + $0x88] sm:$0xff]  ;;  %v291_v28 = vld [vmem:[#allocation2 + $0x90] sm:$0xff]  ;;  %v292_v29 = vld [vmem:[#allocation2 + $0x98] sm:$0xff] }
  0x1a   :  { %v1097_v27 = vpack.c.bf16 %v290_v26, %v289_v25  ;;  %v1100_v30 = vpack.c.bf16 %v292_v29, %v291_v28  ;;  %v1323_v31 = vld [vmem:[#allocation2 + $0x18] sm:$0xff]  ;;  %v420_v6 = vld [vmem:[#allocation2 + $0xb0] sm:$0xff]  ;;  %v422_v11 = vld [vmem:[#allocation2 + $0xc0] sm:$0xff] }
  0x1b   :  { %v193_v38 = vrot.slane %v1323_v31, 2  ;;  %v116_v40 = vrot.slane %v1323_v31, 1  ;;  %v293_v55 = vrot.slane %v1323_v31, 3  ;;  %v421_v8 = vld [vmem:[#allocation2 + $0xb8] sm:$0xff]  ;;  %v424_v14 = vld [vmem:[#allocation2 + $0xd0] sm:$0xff]  ;;  %v426_v17 = vld [vmem:[#allocation2 + $0xe0] sm:$0xff] }
  0x1c   :  { %1083 = vmatpush3.bf16.msra.mxu1 %v1082_v12  ;;  %v1106_v10 = vpack.c.bf16 %v421_v8, %v420_v6  ;;  %v423_v12 = vld [vmem:[#allocation2 + $0xc8] sm:$0xff] }
  0x1d   :  { %1084 = vmatprep.subr.bf16.mxu1 %v1262_v9  ;;  %v1109_v13 = vpack.c.bf16 %v423_v12, %v422_v11 }
  0x20   :  { %1086 = vmatpush3.bf16.msra.mxu1 %v1085_v15  ;;  %v425_v15 = vld [vmem:[#allocation2 + $0xd8] sm:$0xff] }
  0x21   :  { %1087 = vmatprep.subr.bf16.mxu1 %v1262_v9  ;;  %v1112_v16 = vpack.c.bf16 %v425_v15, %v424_v14  ;;  %v519_v14 = vld [vmem:[#allocation2 + $0x170] sm:$0xff]  ;;  %v520_v15 = vld [vmem:[#allocation2 + $0x178] sm:$0xff] }
  0x24   :  { %1089 = vmatpush3.bf16.msra.mxu1 %v1088_v18  ;;  %v427_v18 = vld [vmem:[#allocation2 + $0xe8] sm:$0xff] }
  0x25   :  { %1090 = vmatprep.subr.bf16.mxu1 %v1262_v9  ;;  %v1115_v19 = vpack.c.bf16 %v427_v18, %v426_v17  ;;  %v521_v17 = vld [vmem:[#allocation2 + $0x180] sm:$0xff]  ;;  %v522_v18 = vld [vmem:[#allocation2 + $0x188] sm:$0xff] }
  0x28   :  { %1092 = vmatpush3.bf16.msra.mxu1 %v1091_v21 }
  0x29   :  { %1093 = vmatprep.subr.bf16.mxu1 %v1262_v9 }
  0x2c   :  { %1095 = vmatpush3.bf16.msra.mxu1 %v1094_v24 }
  0x2d   :  { %1096 = vmatprep.subr.bf16.mxu1 %v1262_v9 }
  0x30   :  { %1098 = vmatpush3.bf16.msra.mxu1 %v1097_v27 }
  0x31   :  { %1099 = vmatprep.subr.bf16.mxu1 %v1262_v9 }
  0x34   :  { %1101 = vmatpush3.bf16.msra.mxu1 %v1100_v30 }
  0x35   :  { %1126 = vmatprep.subr.bf16.mxu1 %v1262_v9 }
  0x86   :  { %v30_v4 = vpop.permute.xlu0 %29 }
  0x87   :  { %891 = vmatmul.mubr.msk.f32.vlgmr.msra.gmra.mrb[0].mxu0 %vm31_vm2, %v30_v4 }
  0x88   :  { %894 = vmatpush3.msk.msra.mxu0 %vm34_vm1, %v114_v3  ;;  %895 = vmatprep.mubr.msk.f32.mxu0 %vm1260_vm0, %v1259_v0  ;;  %v1263_v3 = vmov 0  }
  0x89   :  { %898 = vmatprep.subr.mxu0 %v1259_v0  ;;  %1208 = vset.pattern.permute.xlu1 %v1263_v3 }
  0x8a   :  { %1209 = vset.pattern.permute.xlu0 %v1263_v3 }
  0x8b   :  { %896 = vmatmul.mubr.msk.f32.vlgmr.msra.gmra.mrb[2].mxu0 %vm31_vm2, %v30_v4 }
  0x8c   :  { %899 = vmatpush3.msk.msra.mxu0 %vm34_vm1, %v192_v5  ;;  %900 = vmatprep.mubr.msk.f32.mxu0 %vm1260_vm0, %v1259_v0  ;;  %v419_v5 = vld [vmem:[#allocation2 + $0xa8] sm:$0xff] }
  0x8d   :  { %1102 = vmatprep.subr.bf16.mxu0 %v1262_v9 }
  0x8f   :  { %901 = vmatmul.mubr.msk.f32.vlgmr.msra.gmra.mrb[4].mxu0 %vm31_vm2, %v30_v4  ;;  %v418_v4 = vld [vmem:[#allocation2 + $0xa0] sm:$0xff] }
  0x90   :  { %970 = vmatprep.mubr.msk.f32.mxu0 %vm1260_vm0, %v1259_v0  ;;  %v1103_v7 = vpack.c.bf16 %v419_v5, %v418_v4  ;;  %v395_v5 = vlaneseq }
  0x92   :  { %1104 = vmatpush3.bf16.msra.mxu0 %v1103_v7  ;;  %v396_v7 = vand.u32 127, %v395_v5  ;;  %v1346_v8 = vshrl.u32 %v395_v5, 7 }
  0x93   :  { %1105 = vmatprep.subr.bf16.mxu0 %v1262_v9 }
  0x94   :  { %vm399_vm7 = vcmp.lt.s32.totalorder %v396_v7, 3  ;;  %v414_v11 = vsub.s32 0, %v1346_v8  ;;  %v527_v5 = vsub.s32 5, %v1346_v8 }
  0x96   :  { %1107 = vmatpush3.bf16.msra.mxu0 %v1106_v10 }
  0x97   :  { %1108 = vmatprep.subr.bf16.mxu0 %v1262_v9 }
  0x9a   :  { %1110 = vmatpush3.bf16.msra.mxu0 %v1109_v13 }
  0x9b   :  { %1111 = vmatprep.subr.bf16.mxu0 %v1262_v9 }
  0x9e   :  { %1113 = vmatpush3.bf16.msra.mxu0 %v1112_v16  ;;  %v1142_v16 = vpack.c.bf16 %v520_v15, %v519_v14  ;;  %v702_v14 = vld [vmem:[#allocation2 + $0x278] sm:$0xff] }
  0x9f   :  { %1114 = vmatprep.subr.bf16.mxu0 %v1262_v9 }
  0xa2   :  { %1116 = vmatpush3.bf16.msra.mxu0 %v1115_v19  ;;  %v1145_v19 = vpack.c.bf16 %v522_v18, %v521_v17  ;;  %v704_v17 = vld [vmem:[#allocation2 + $0x288] sm:$0xff] }
  0xa3   :  { %1117 = vmatprep.subr.bf16.mxu0 %v1262_v9 }
 0x15a   :  { %v104_v32 = vpop.f32.mrb[0].mxu0 }
 0x15b   :  { %v105_v33 = vadd.f32 %v104_v32, %v1323_v31  ;;  %v892_v34 = vpop.f32.mrb[1].mxu0 }
 0x15d   :  { %v789_v35 = vmul.f32 -1.442695, %v105_v33 }
 0x15e   :  { %v187_v36 = vpop.f32.mrb[2].mxu0 }
 0x15f   :  { %1210 = vpow2.f32 %v789_v35  ;;  %v897_v37 = vpop.f32.mrb[3].mxu0  ;;  %v188_v44 = vadd.f32 %v187_v36, %v116_v40  ;;  %v428_v40 = vld [vmem:[#allocation2 + $0xf0] sm:$0xff] }
 0x162   :  { %v264_v39 = vpop.f32.mrb[4].mxu0 }
 0x163   :  { %v265_v41 = vadd.f32 %v264_v39, %v193_v38  ;;  %v902_v42 = vpop.f32.mrb[5].mxu0 }
 0x165   :  { %v794_v43 = vmul.f32 -1.442695, %v265_v41  ;;  %v429_v41 = vld [vmem:[#allocation2 + $0xf8] sm:$0xff] }
 0x167   :  { %1212 = vpow2.f32 %v794_v43  ;;  %v1118_v43 = vpack.c.bf16 %v429_v41, %v428_v40 }
 0x168   :  { %1214 = vtanh.f32 %v188_v44  ;;  %v430_v44 = vld [vmem:[#allocation2 + $0x100] sm:$0xff] }
 0x169   :  { %v1211_v45 = vpop.eup %1210  ;;  %1119 = vmatpush3.bf16.msra.mxu0 %v1118_v43  ;;  %v610_v43 = vld [vmem:[#allocation2 + $0x1f0] sm:$0xff] }
 0x16a   :  { %v111_v46 = vadd.f32 1.0, %v1211_v45  ;;  %1120 = vmatprep.subr.bf16.mxu0 %v1262_v9  ;;  %v431_v45 = vld [vmem:[#allocation2 + $0x108] sm:$0xff] }
 0x16c   :  { %1216 = vrcp.f32 %v111_v46 }
 0x171   :  { %v1213_v47 = vpop.eup %1212 }
 0x172   :  { %v271_v48 = vadd.f32 1.0, %v1213_v47  ;;  %v1215_v49 = vpop.eup %1214  ;;  %v1121_v47 = vpack.c.bf16 %v431_v45, %v430_v44  ;;  %v611_v44 = vld [vmem:[#allocation2 + $0x1f8] sm:$0xff] }
 0x173   :  { %v1166_v45 = vpack.c.bf16 %v611_v44, %v610_v43 }
 0x174   :  { %1218 = vrcp.f32 %v271_v48  ;;  %1122 = vmatpush3.bf16.msra.mxu0 %v1121_v47  ;;  %v432_v48 = vld [vmem:[#allocation2 + $0x110] sm:$0xff]  ;;  %v613_v47 = vld [vmem:[#allocation2 + $0x208] sm:$0xff] }
 0x175   :  { %1123 = vmatprep.subr.bf16.mxu0 %v1262_v9 }
 0x176   :  { %v1217_v50 = vpop.eup %1216 }
 0x177   :  { %v274_v51 = vmul.f32 %v1217_v50, %v1215_v49  ;;  %v433_v49 = vld [vmem:[#allocation2 + $0x118] sm:$0xff] }
 0x178   :  { %v1124_v50 = vpack.c.bf16 %v433_v49, %v432_v48  ;;  %v614_v49 = vld [vmem:[#allocation2 + $0x210] sm:$0xff] }
 0x179   :  { %1220 = vtanh.f32 %v274_v51  ;;  %v509_v51 = vld [vmem:[#allocation2 + $0x120] sm:$0xff] }
 0x17a   :  { %1125 = vmatpush3.bf16.msra.mxu0 %v1124_v50  ;;  %v615_v50 = vld [vmem:[#allocation2 + $0x218] sm:$0xff] }
 0x17b   :  { %1150 = vmatprep.subr.bf16.mxu0 %v1262_v9 }
 0x17e   :  { %v1219_v52 = vpop.eup %1218 }
 0x183   :  { %v1221_v53 = vpop.eup %1220 }
 0x184   :  { %v276_v54 = vmul.f32 %v1221_v53, %v1219_v52  ;;  %v510_v52 = vld [vmem:[#allocation2 + $0x128] sm:$0xff]  ;;  %v511_v53 = vld [vmem:[#allocation2 + $0x130] sm:$0xff] }
 0x186   :  { %936 = vmatmul.mubr.f32.vlgmr.msra.gmra.mrb[0].mxu1 %v276_v54  ;;  %v1127_v54 = vpack.c.bf16 %v510_v52, %v509_v51  ;;  %v1172_v51 = vpack.c.bf16 %v615_v50, %v614_v49  ;;  %v691_v52 = vld [vmem:[#allocation2 + $0x220] sm:$0xff] }
 0x187   :  { %1005 = vmatprep.mubr.msk.f32.mxu1 %vm1260_vm0, %v1259_v0 }
 0x188   :  { %1128 = vmatpush3.bf16.msra.mxu1 %v1127_v54  ;;  %v693_v54 = vld [vmem:[#allocation2 + $0x230] sm:$0xff] }
 0x189   :  { %1129 = vmatprep.subr.bf16.mxu1 %v1262_v9 }
 0x259   :  { %v361_v56 = vpop.f32.mrb[0].mxu1 }
 0x25a   :  { %v362_v57 = vadd.f32 %v361_v56, %v293_v55  ;;  %v937_v58 = vpop.f32.mrb[1].mxu1  ;;  %v512_v55 = vld [vmem:[#allocation2 + $0x138] sm:$0xff] }
 0x25b   :  { %v1130_v56 = vpack.c.bf16 %v512_v55, %v511_v53  ;;  %v514_v58 = vld [vmem:[#allocation2 + $0x148] sm:$0xff]  ;;  %v694_v55 = vld [vmem:[#allocation2 + $0x238] sm:$0xff] }
 0x25c   :  { %v366_v59 = vsel %vm365_vm3, %v362_v57, -inf  ;;  %v692_v53 = vld [vmem:[#allocation2 + $0x228] sm:$0xff] }
 0x25d   :  { %367 = vmax.xlane.f32.xlu0 %v366_v59  ;;  %1131 = vmatpush3.bf16.msra.mxu1 %v1130_v56  ;;  %v1178_v56 = vpack.c.bf16 %v694_v55, %v693_v54 }
 0x25e   :  { %1132 = vmatprep.subr.bf16.mxu1 %v1262_v9 }
 0x2ea   :  { %v368_v60 = vpop.xlane.xlu0 %367 }
 0x2eb   :  { %v369_v61 = vsub.f32 %v362_v57, %v368_v60 }
 0x2ed   :  { %v370_v62 = vmul.f32 1.442695, %v369_v61  ;;  %v516_v61 = vld [vmem:[#allocation2 + $0x158] sm:$0xff] }
 0x2ef   :  { %1222 = vpow2.f32 %v370_v62 }
 0x2f9   :  { %v1223_v63 = vpop.eup %1222 }
 0x2fa   :  { %v372_v2 = vsel %vm365_vm3, %v1223_v63, 0.0  ;;  %v517_v63 = vld [vmem:[#allocation2 + $0x160] sm:$0xff] }
 0x2fb   :  { %373 = vadd.xlane.f32.xlu1 %v372_v2  ;;  %v518_v2 = vld [vmem:[#allocation2 + $0x168] sm:$0xff] }
 0x2fc   :  { %v1139_v4 = vpack.c.bf16 %v518_v2, %v517_v63  ;;  %v699_v63 = vld [vmem:[#allocation2 + $0x260] sm:$0xff]  ;;  %v700_v2 = vld [vmem:[#allocation2 + $0x268] sm:$0xff] }
 0x388   :  { %v374_v20 = vpop.xlane.xlu1 %373 }
 0x389   :  { %1224 = vlog2.f32 %v374_v20  ;;  %v523_v20 = vld [vmem:[#allocation2 + $0x190] sm:$0xff] }
 0x393   :  { %v1225_v21 = vpop.eup %1224 }
 0x394   :  { %v376_v22 = vmul.f32 0.6931472, %v1225_v21  ;;  %v524_v21 = vld [vmem:[#allocation2 + $0x198] sm:$0xff] }
 0x396   :  { %v377_v23 = vadd.f32 %v376_v22, %v368_v60  ;;  %v515_v60 = vld [vmem:[#allocation2 + $0x150] sm:$0xff]  ;;  %v601_v22 = vld [vmem:[#allocation2 + $0x1a8] sm:$0xff] }
 0x397   :  { %v1136_v62 = vpack.c.bf16 %v516_v61, %v515_v60  ;;  %v697_v60 = vld [vmem:[#allocation2 + $0x250] sm:$0xff]  ;;  %v698_v61 = vld [vmem:[#allocation2 + $0x258] sm:$0xff] }
 0x398   :  { %v378_v24 = vsub.f32 %v362_v57, %v377_v23  ;;  %v513_v57 = vld [vmem:[#allocation2 + $0x140] sm:$0xff]  ;;  %v602_v23 = vld [vmem:[#allocation2 + $0x1b0] sm:$0xff] }
 0x399   :  { %v1133_v59 = vpack.c.bf16 %v514_v58, %v513_v57  ;;  %v695_v57 = vld [vmem:[#allocation2 + $0x240] sm:$0xff]  ;;  %v696_v58 = vld [vmem:[#allocation2 + $0x248] sm:$0xff] }
 0x39a   :  { %vm379_vm4 = vcmp.lt.f32.partialorder %v378_v24, 0.0  ;;  %v380_v25 = vceil.f32 %v378_v24  ;;  %v381_v26 = vfloor.f32 %v378_v24 }
 0x39b   :  { %1134 = vmatpush3.bf16.msra.mxu1 %v1133_v59  ;;  %v1181_v59 = vpack.c.bf16 %v696_v58, %v695_v57 }
 0x39c   :  { %v382_v27 = vsel %vm379_vm4, %v380_v25, %v381_v26  ;;  %1135 = vmatprep.subr.bf16.mxu1 %v1262_v9  ;;  %v603_v25 = vld [vmem:[#allocation2 + $0x1b8] sm:$0xff] }
 0x39d   :  { %v384_v28 = vmul.f32 0.33333334, %v382_v27  ;;  %v1154_v26 = vpack.c.bf16 %v603_v25, %v602_v23 }
 0x39f   :  { %v385_v29 = vfloor.f32 %v384_v28  ;;  %1137 = vmatpush3.bf16.msra.mxu1 %v1136_v62  ;;  %v605_v28 = vld [vmem:[#allocation2 + $0x1c8] sm:$0xff]  ;;  %v1184_v62 = vpack.c.bf16 %v698_v61, %v697_v60 }
 0x3a0   :  { %1138 = vmatprep.subr.bf16.mxu1 %v1262_v9 }
 0x3a1   :  { %v386_v30 = vmul.f32 3.0, %v385_v29 }
 0x3a3   :  { %v387_v32 = vsub.f32 %v382_v27, %v386_v30  ;;  %1140 = vmatpush3.bf16.msra.mxu1 %v1139_v4  ;;  %v604_v27 = vld [vmem:[#allocation2 + $0x1c0] sm:$0xff]  ;;  %v606_v30 = vld [vmem:[#allocation2 + $0x1d0] sm:$0xff]  ;;  %v1187_v4 = vpack.c.bf16 %v700_v2, %v699_v63 }
 0x3a4   :  { %1141 = vmatprep.subr.bf16.mxu1 %v1262_v9  ;;  %v1157_v29 = vpack.c.bf16 %v605_v28, %v604_v27 }
 0x3a5   :  { %v1198_v33 = vtrunc.f32 %v387_v32  ;;  %v607_v32 = vld [vmem:[#allocation2 + $0x1d8] sm:$0xff] }
 0x3a7   :  { %v1199_v34 = vcvt.f32.s32 %v1198_v33  ;;  %1143 = vmatpush3.bf16.msra.mxu1 %v1142_v16  ;;  %v1160_v33 = vpack.c.bf16 %v607_v32, %v606_v30  ;;  %v703_v16 = vld [vmem:[#allocation2 + $0x280] sm:$0xff] }
 0x3a8   :  { %1144 = vmatprep.subr.bf16.mxu1 %v1262_v9  ;;  %v1193_v18 = vpack.c.bf16 %v704_v17, %v703_v16 }
 0x3a9   :  { %vm389_vm5 = vcmp.ge.s32.totalorder %v1199_v34, 3  ;;  %v795_v35 = vadd.s32 4294967293, %v1199_v34 }
 0x3ab   :  { %v391_v36 = vsel %vm389_vm5, %v795_v35, %v1199_v34  ;;  %1146 = vmatpush3.bf16.msra.mxu1 %v1145_v19  ;;  %v608_v34 = vld [vmem:[#allocation2 + $0x1e0] sm:$0xff]  ;;  %v609_v35 = vld [vmem:[#allocation2 + $0x1e8] sm:$0xff]  ;;  %v705_v19 = vld [vmem:[#allocation2 + $0x290] sm:$0xff] }
 0x3ac   :  { %vm392_vm6 = vcmp.lt.s32.totalorder %v391_v36, 0  ;;  %v393_v37 = vadd.s32 3, %v391_v36  ;;  %1147 = vmatprep.subr.bf16.mxu1 %v1262_v9 }
 0x3ae   :  { %v394_v38 = vsel %vm392_vm6, %v393_v37, %v391_v36  ;;  %v1163_v36 = vpack.c.bf16 %v609_v35, %v608_v34  ;;  %v436_v37 = vsub.s32 4, %v1346_v8 }
 0x3af   :  { %v397_v39 = vmul.u32 3, %v394_v38 }
 0x3b0   :  { %v437_v38 = vrot.slane %v1323_v31, %v436_v37 }
 0x3b1   :  { %v398_v42 = vadd.s32 3, %v397_v39 }
 0x3b3   :  { %401 = vperm.xlu1 %1208, %v398_v42   ;;  %v404_v46 = vadd.s32 3, %v398_v42 }
 0x3b7   :  { %406 = vperm.xlu1 %1208, %v404_v46   ;;  %v612_v46 = vld [vmem:[#allocation2 + $0x200] sm:$0xff] }
 0x3b8   :  { %v1169_v48 = vpack.c.bf16 %v613_v47, %v612_v46 }
 0x432   :  { %v402_v6 = vpop.permute.xlu1 %401 }
 0x433   :  { %vm403_vm8 = vcmp.ge.s32.totalorder %v396_v7, %v402_v6  ;;  %v528_v6 = vrot.slane %v1323_v31, %v527_v5 }
 0x436   :  { %v407_v10 = vpop.permute.xlu1 %406 }
 0x437   :  { %vm408_vm9 = vcmp.lt.s32.totalorder %v396_v7, %v407_v10 }
 0x438   :  { %vm409_vm10 = vmand %vm403_vm8, %vm408_vm9 }
 0x439   :  { %vm410_vm11 = vmor %vm399_vm7, %vm409_vm10 }
 0x43a   :  { %v411_v12 = vsel %vm410_vm11, 1, %v1263_v3  ;;  %v1148_v3 = vpack.c.bf16 %v524_v21, %v523_v20  ;;  %v706_v20 = vld [vmem:[#allocation2 + $0x298] sm:$0xff] }
 0x43b   :  { %v415_v13 = vrot.slane %v411_v12, %v414_v11  ;;  %v1196_v21 = vpack.c.bf16 %v706_v20, %v705_v19 }
 0x43c   :  { %1149 = vmatpush3.bf16.msra.mxu1 %v1148_v3  ;;  %v618_v3 = vsub.s32 6, %v1346_v8 }
 0x43d   :  { %vm416_vm12 = vcmp.eq.s32.totalorder %v415_v13, 1  ;;  %1174 = vmatprep.subr.bf16.mxu1 %v1262_v9  ;;  %v701_v13 = vld [vmem:[#allocation2 + $0x270] sm:$0xff] }
 0x43e   :  { %971 = vmatmul.mubr.msk.f32.vlgmr.msra.gmra.mrb[6].mxu0 %vm416_vm12, %v1299_v1  ;;  %v600_v1 = vld [vmem:[#allocation2 + $0x1a0] sm:$0xff]  ;;  %v1190_v15 = vpack.c.bf16 %v702_v14, %v701_v13 }
 0x43f   :  { %1040 = vmatprep.mubr.msk.f32.mxu0 %vm1260_vm0, %v1259_v0  ;;  %v1151_v24 = vpack.c.bf16 %v601_v22, %v600_v1  ;;  %v619_v1 = vrot.slane %v1323_v31, %v618_v3 }
 0x441   :  { %1152 = vmatpush3.bf16.msra.mxu0 %v1151_v24 }
 0x442   :  { %1153 = vmatprep.subr.bf16.mxu0 %v1262_v9 }
 0x445   :  { %1155 = vmatpush3.bf16.msra.mxu0 %v1154_v26  ;;  %v709_v26 = vsub.s32 7, %v1346_v8 }
 0x446   :  { %1156 = vmatprep.subr.bf16.mxu0 %v1262_v9 }
 0x447   :  { %v710_v27 = vrot.slane %v1323_v31, %v709_v26 }
 0x449   :  { %1158 = vmatpush3.bf16.msra.mxu0 %v1157_v29 }
 0x44a   :  { %1159 = vmatprep.subr.bf16.mxu0 %v1262_v9 }
 0x44d   :  { %1161 = vmatpush3.bf16.msra.mxu0 %v1160_v33 }
 0x44e   :  { %1162 = vmatprep.subr.bf16.mxu0 %v1262_v9 }
 0x451   :  { %1164 = vmatpush3.bf16.msra.mxu0 %v1163_v36 }
 0x452   :  { %1165 = vmatprep.subr.bf16.mxu0 %v1262_v9 }
 0x455   :  { %1167 = vmatpush3.bf16.msra.mxu0 %v1166_v45 }
 0x456   :  { %1168 = vmatprep.subr.bf16.mxu0 %v1262_v9 }
 0x459   :  { %1170 = vmatpush3.bf16.msra.mxu0 %v1169_v48 }
 0x45a   :  { %1171 = vmatprep.subr.bf16.mxu0 %v1262_v9 }
 0x45d   :  { %1173 = vmatpush3.bf16.msra.mxu0 %v1172_v51 }
 0x511   :  { %v504_v39 = vpop.f32.mrb[6].mxu0 }
 0x512   :  { %v505_v40 = vadd.f32 %v504_v39, %v437_v38  ;;  %v972_v41 = vpop.f32.mrb[7].mxu0 }
 0x514   :  { %1226 = vtanh.f32 %v505_v40 }
 0x51e   :  { %v1227_v42 = vpop.eup %1226 }
 0x51f   :  { %1006 = vmatmul.mubr.f32.vlgmr.msra.gmra.mrb[2].mxu1 %v1227_v42 }
 0x520   :  { %1075 = vmatprep.mubr.msk.f32.mxu1 %vm1260_vm0, %v1259_v0  ;;  %v1175_v0 = vpack.c.bf16 %v692_v53, %v691_v52 }
 0x522   :  { %1176 = vmatpush3.bf16.msra.mxu1 %v1175_v0 }
 0x523   :  { %1177 = vmatprep.subr.bf16.mxu1 %v1262_v9 }
 0x526   :  { %1179 = vmatpush3.bf16.msra.mxu1 %v1178_v56 }
 0x527   :  { %1180 = vmatprep.subr.bf16.mxu1 %v1262_v9 }
 0x52a   :  { %1182 = vmatpush3.bf16.msra.mxu1 %v1181_v59 }
 0x52b   :  { %1183 = vmatprep.subr.bf16.mxu1 %v1262_v9 }
 0x52e   :  { %1185 = vmatpush3.bf16.msra.mxu1 %v1184_v62 }
 0x52f   :  { %1186 = vmatprep.subr.bf16.mxu1 %v1262_v9 }
 0x532   :  { %1188 = vmatpush3.bf16.msra.mxu1 %v1187_v4 }
 0x533   :  { %1189 = vmatprep.subr.bf16.mxu1 %v1262_v9 }
 0x536   :  { %1191 = vmatpush3.bf16.msra.mxu1 %v1190_v15 }
 0x537   :  { %1192 = vmatprep.subr.bf16.mxu1 %v1262_v9 }
 0x53a   :  { %1194 = vmatpush3.bf16.msra.mxu1 %v1193_v18 }
 0x53b   :  { %1195 = vmatprep.subr.bf16.mxu1 %v1262_v9 }
 0x53e   :  { %1197 = vmatpush3.bf16.msra.mxu1 %v1196_v21 }
 0x5f2   :  { %v595_v7 = vpop.f32.mrb[2].mxu1 }
 0x5f3   :  { %v596_v10 = vadd.f32 %v595_v7, %v528_v6  ;;  %v1007_v11 = vpop.f32.mrb[3].mxu1 }
 0x5f5   :  { %1228 = vtanh.f32 %v596_v10 }
 0x5ff   :  { %v1229_v12 = vpop.eup %1228 }
 0x600   :  { %1041 = vmatmul.mubr.f32.vlgmr.msra.gmra.mrb[8].mxu0 %v1229_v12 }
 0x6d3   :  { %v686_v22 = vpop.f32.mrb[8].mxu0 }
 0x6d4   :  { %v687_v23 = vadd.f32 %v686_v22, %v619_v1  ;;  %v1042_v24 = vpop.f32.mrb[9].mxu0 }
 0x6d6   :  { %1230 = vtanh.f32 %v687_v23 }
 0x6e0   :  { %v1231_v25 = vpop.eup %1230 }
 0x6e1   :  { %1076 = vmatmul.mubr.f32.vlgmr.msra.gmra.mrb[4].mxu1 %v1231_v25 }
 0x7b4   :  { %v777_v28 = vpop.f32.mrb[4].mxu1 }
 0x7b5   :  { %v778_v29 = vadd.f32 %v777_v28, %v710_v27  ;;  %v1077_v30 = vpop.f32.mrb[5].mxu1 }
 0x7b7   :  { %781 = vst [vmem:[%s1385_s2] sm:$0x3] %v778_v29 }
 0x7b8   :  { %786 = vsyncpa [#allocation3], 1 }

</bundles_post_ra>
